<compile_context>
chip_gen: v5e
topology: v5e:2x2
jax: 0.10.0
libtpu: 0.0.40
codegen_flags: <defaults>
</compile_context>

<pallas_src>
import functools

import jax
import jax.numpy as jnp
from jax.experimental import pallas as pl
from jax.experimental.pallas import tpu as pltpu

BN_EPS = 1e-5


def _vmem_capacity_bytes():
    """Physical VMEM of the attached TPU (64 MiB v7x, 128 MiB v5e/v6e)."""
    try:
        return int(pltpu.get_tpu_info().vmem_capacity_bytes)
    except Exception:
        return 64 * 1024 * 1024          # conservative (v7x-sized) fallback


# ---------------------------------------------------------------------------
# Fused kernel: grid = (2, N // Bn)
#   phase 0 (p==0): conv (single folded-K MXU matmul) + running BN stats
#   phase 1 (p==1): fold BN once, per-element FMA + residual + ReLU
# ---------------------------------------------------------------------------
def _root_fused_kernel(x_ref, w_ref, g_ref, beta_ref, mask_ref, *rest,
                       k, L, Lp, Bn, W, m, residual):
    # x_ref   : (1, Cin, Bn*Lp)  compute dtype; Bn padded samples along lanes
    # w_ref   : (Cout, k*Cin)    compute dtype; taps folded into K
    # g_ref   : (Cout, 1) f32    BN gamma
    # beta_ref: (Cout, 1) f32    BN beta
    # mask_ref: (1, W)    f32    1.0 on valid output columns, 0.0 on the
    #                            2*pad junk columns between samples
    # res_ref : (Bn, Cout, L)    children[0] block      (only when residual)
    # o_ref   : (Bn, Cout, L)    output block
    # scratch : y_all (NB,Cout,W) f32 resident conv output for all blocks,
    #           rhs (k*Cin, W) shifted-slice stack, ssum/ssq/scale/shift.
    if residual:
        res_ref, o_ref, y_all, rhs, ssum, ssq, scale, shift = rest
    else:
        res_ref = None
        o_ref, y_all, rhs, ssum, ssq, scale, shift = rest

    p = pl.program_id(0)      # 0 = conv + stats, 1 = normalize + activate
    b = pl.program_id(1)      # batch-block index
    cin = x_ref.shape[1]

    # ---- phase 0: conv + running per-channel statistics -------------------
    @pl.when(jnp.logical_and(p == 0, b == 0))
    def _init_stats():
        ssum[...] = jnp.zeros_like(ssum)
        ssq[...] = jnp.zeros_like(ssq)

    @pl.when(p == 0)
    def _conv_and_stats():
        x2d = x_ref[0]                                    # (Cin, Bn*Lp)
        # Stack the k shifted slices along sublanes -> K = k*Cin contraction.
        for t in range(k):                                # k is small, static
            rhs[pl.ds(t * cin, cin), :] = x2d[:, t:t + W]
        y = jnp.dot(w_ref[...], rhs[...],
                    preferred_element_type=jnp.float32)   # (Cout, W) f32
        y_all[b] = y                                      # stays in VMEM
        ym = y * mask_ref[...]                            # drop junk columns
        ssum[...] += jnp.sum(ym, axis=1, keepdims=True)
        ssq[...] += jnp.sum(ym * y, axis=1, keepdims=True)

    # ---- phase 1: fold BN once, then FMA + residual + ReLU ----------------
    @pl.when(jnp.logical_and(p == 1, b == 0))
    def _fold_bn():
        inv_m = 1.0 / m
        mean = ssum[...] * inv_m
        var = jnp.maximum(ssq[...] * inv_m - mean * mean, 0.0)   # clamp
        sc = g_ref[...] * jax.lax.rsqrt(var + BN_EPS)            # EUP
        scale[...] = sc
        shift[...] = beta_ref[...] - mean * sc

    @pl.when(p == 1)
    def _apply():
        ybn = y_all[b] * scale[...] + shift[...]          # (Cout, W) FMA
        for s in range(Bn):                               # strip pad columns
            v = ybn[:, s * Lp:s * Lp + L]                 # (Cout, L)
            if residual:
                v = v + res_ref[s].astype(jnp.float32)
            o_ref[s] = jnp.maximum(v, 0.0).astype(o_ref.dtype)


# ---------------------------------------------------------------------------
# Wrapper
# ---------------------------------------------------------------------------
def root_forward(children, weight, gamma, beta, kernel_size, residual,
                 *, compute_dtype=jnp.bfloat16, out_dtype=None):
    """children: list of (N, C_i, L) NCL arrays.  weight: (Cout, Cin, k)."""
    k = kernel_size
    assert k % 2 == 1, "Root assumes odd kernel_size (same-length conv)"
    pad = (k - 1) // 2

    x = jnp.concatenate(children, axis=1) if len(children) > 1 else children[0]
    N, Cin, L = x.shape
    Cout = weight.shape[0]
    if out_dtype is None:
        out_dtype = children[0].dtype
    csize = jnp.dtype(compute_dtype).itemsize
    osize = jnp.dtype(out_dtype).itemsize
    res_size = children[0].dtype.itemsize if residual else 0

    # Generation-aware VMEM budget (don't hard-code 32 MiB everywhere):
    # ~48 MiB on v7x (64 MiB physical), ~96 MiB on v5e/v6e (128 MiB physical).
    vmem_cap = _vmem_capacity_bytes()
    vmem_limit = min(int(0.75 * vmem_cap), 112 * 1024 * 1024)

    # ---- pick Bn: samples per grid step (amortize the ~0.35us/step cost) ---
    Lp = L + 2 * pad
    per_sample = Cin * Lp * csize + Cout * L * (osize + res_size)
    bn_bytes = max(1, (2 * 1024 * 1024) // max(per_sample, 1))  # ~2 MiB blocks
    # Keep the f32 (Cout, W) conv tile comfortably inside the vreg file.
    bn_vregs = max(1, ((128 * 1024) // (4 * Cout) + 2 * pad) // Lp)
    Bn = max(1, min(N, bn_bytes, bn_vregs))
    while N % Bn:
        Bn -= 1
    NB = N // Bn
    BW = Bn * Lp                 # lane width of one input block
    W = BW - 2 * pad             # lane width of one conv-output block

    # ---- lane-dense slab layout (wrapper-side layout plumbing only) --------
    # Bn zero-padded samples laid end-to-end along L; each sample keeps its
    # own halo so conv windows never cross sample boundaries.
    x_pad = jnp.pad(x, ((0, 0), (0, 0), (pad, pad))).astype(compute_dtype)
    x_slab = (x_pad.reshape(NB, Bn, Cin, Lp)
                    .transpose(0, 2, 1, 3)
                    .reshape(NB, Cin, BW))

    # Taps folded into the contraction dim: W_cat[o, t*Cin + c] = w[o, c, t].
    w_cat = jnp.transpose(weight, (0, 2, 1)).reshape(Cout, k * Cin)
    w_cat = w_cat.astype(compute_dtype)

    gamma2 = gamma.astype(jnp.float32).reshape(Cout, 1)
    beta2 = beta.astype(jnp.float32).reshape(Cout, 1)

    # 1.0 on each sample's L valid output columns, 0.0 on the 2*pad junk
    # columns between samples (keeps them out of the BN statistics).
    col_valid = jnp.tile(
        jnp.concatenate([jnp.ones((L,), jnp.float32),
                         jnp.zeros((2 * pad,), jnp.float32)]), Bn)[:W]
    col_valid = col_valid.reshape(1, W)

    # ---- fused-fit check (conv intermediate must stay resident in VMEM) ----
    resident = NB * Cout * W * 4 + k * Cin * W * csize + 4 * Cout * 4
    blocks = 2 * (Cin * BW * csize + Bn * Cout * L * (osize + res_size))
    small = w_cat.size * csize + (2 * Cout + W) * 4
    if resident + blocks + small > int(0.85 * vmem_limit):
        # TODO(synk): large-shape spill path (two pallas_calls with a bf16
        # conv intermediate in HBM) not implemented in this revision.
        raise NotImplementedError(
            "Root fused kernel: conv intermediate does not fit VMEM on this "
            "TPU generation at these shapes.")

    operands = [x_slab, w_cat, gamma2, beta2, col_valid]
    in_specs = [
        # x only needed in phase 0: park on block 0 during phase 1.
        pl.BlockSpec((1, Cin, BW), lambda p, b: (b * (1 - p), 0, 0)),
        pl.BlockSpec((Cout, k * Cin), lambda p, b: (0, 0)),
        pl.BlockSpec((Cout, 1), lambda p, b: (0, 0)),
        pl.BlockSpec((Cout, 1), lambda p, b: (0, 0)),
        pl.BlockSpec((1, W), lambda p, b: (0, 0)),
    ]
    if residual:
        res = children[0]
        assert res.shape[1] == Cout, "residual requires children[0] C == Cout"
        operands.append(res)
        # residual only needed in phase 1: park on block 0 during phase 0.
        in_specs.append(pl.BlockSpec((Bn, Cout, L), lambda p, b: (b * p, 0, 0)))

    flops = int(2 * N * L * Cin * k * Cout + 5 * N * Cout * L)
    bytes_accessed = int(x_slab.size * csize + w_cat.size * csize
                         + (3 * Cout + W) * 4
                         + (N * Cout * L * res_size if residual else 0)
                         + N * Cout * L * osize)

    out = pl.pallas_call(
        functools.partial(_root_fused_kernel, k=k, L=L, Lp=Lp, Bn=Bn, W=W,
                          m=float(N * L), residual=residual),
        out_shape=jax.ShapeDtypeStruct((N, Cout, L), out_dtype),
        grid=(2, NB),
        in_specs=in_specs,
        # Output only written in phase 1; parked on block 0 during phase 0 so
        # no stale buffer is ever written back.
        out_specs=pl.BlockSpec((Bn, Cout, L), lambda p, b: (b * p, 0, 0)),
        scratch_shapes=[
            pltpu.VMEM((NB, Cout, W), jnp.float32),   # resident conv output
            pltpu.VMEM((k * Cin, W), compute_dtype),  # folded-K RHS stack
            pltpu.VMEM((Cout, 1), jnp.float32),       # sum
            pltpu.VMEM((Cout, 1), jnp.float32),       # sum of squares
            pltpu.VMEM((Cout, 1), jnp.float32),       # folded BN scale
            pltpu.VMEM((Cout, 1), jnp.float32),       # folded BN shift
        ],
        compiler_params=pltpu.CompilerParams(
            # Stats are carried across the batch axis and the phase axis is
            # inherently ordered -> both 'arbitrary'.
            # TODO(synk): on v7x (2 TCs) split phase 0 across cores with
            # per-core partial stats; single-core is correct everywhere.
            dimension_semantics=("arbitrary", "arbitrary"),
            vmem_limit_bytes=vmem_limit),
        cost_estimate=pl.CostEstimate(flops=flops, transcendentals=int(Cout),
                                      bytes_accessed=bytes_accessed),
    )(*operands)

    return out   # NCL: (N, Cout, L)


# ---------------------------------------------------------------------------
# Pure-JAX reference matching the PyTorch module (training-mode BN).
# ---------------------------------------------------------------------------
def root_reference(children, weight, gamma, beta, kernel_size, residual):
    x = jnp.concatenate(children, axis=1)
    pad = (kernel_size - 1) // 2
    y = jax.lax.conv_general_dilated(
        x.astype(jnp.float32), weight.astype(jnp.float32),
        window_strides=(1,), padding=[(pad, pad)],
        dimension_numbers=("NCH", "OIH", "NCH"))
    mean = y.mean(axis=(0, 2), keepdims=True)
    var = ((y - mean) ** 2).mean(axis=(0, 2), keepdims=True)
    y = (y - mean) / jnp.sqrt(var + BN_EPS)
    y = y * gamma[None, :, None] + beta[None, :, None]
    if residual:
        y = y + children[0]
    return jnp.maximum(y, 0.0)


if __name__ == "__main__":
    # Root(in_channels=32, out_channels=16, kernel_size=3, residual=True)
    # fed two children of 16 channels each.
    N, L = 2, 16
    C1, C2 = 16, 16
    Cout = 16
    kernel_size = 3
    residual = True
    Cin = C1 + C2

    key = jax.random.PRNGKey(0)
    k0, k1, k2, k3, k4 = jax.random.split(key, 5)

    child0 = jax.random.normal(k0, (N, C1, L), dtype=jnp.float32)
    child1 = jax.random.normal(k1, (N, C2, L), dtype=jnp.float32)
    weight = 0.1 * jax.random.normal(k2, (Cout, Cin, kernel_size),
                                     dtype=jnp.float32)
    gamma = 1.0 + 0.1 * jax.random.normal(k3, (Cout,), dtype=jnp.float32)
    beta = 0.1 * jax.random.normal(k4, (Cout,), dtype=jnp.float32)

    ref = root_reference([child0, child1], weight, gamma, beta,
                         kernel_size, residual)

    # f32 MXU path: tight check against the pure-JAX reference.
    out_f32 = root_forward([child0, child1], weight, gamma, beta, kernel_size,
                           residual, compute_dtype=jnp.float32)
    out_f32 = jax.block_until_ready(out_f32)
    assert out_f32.shape == (N, Cout, L)
    assert jnp.allclose(out_f32, ref, atol=1e-4, rtol=1e-4), (
        f"f32 max abs err {jnp.max(jnp.abs(out_f32 - ref))}")

    # bf16 MXU path (f32 accumulation): loose tolerance vs f32 reference.
    out_bf16 = root_forward([child0, child1], weight, gamma, beta, kernel_size,
                            residual, compute_dtype=jnp.bfloat16)
    out_bf16 = jax.block_until_ready(out_bf16)
    assert float(jnp.max(jnp.abs(out_bf16 - ref))) < 1e-1, (
        f"bf16 max abs err {jnp.max(jnp.abs(out_bf16 - ref))}")

    # residual=False specialization (no residual operand is built or DMA'd).
    ref_nr = root_reference([child0, child1], weight, gamma, beta,
                            kernel_size, False)
    out_nr = root_forward([child0, child1], weight, gamma, beta, kernel_size,
                          False, compute_dtype=jnp.float32)
    out_nr = jax.block_until_ready(out_nr)
    assert jnp.allclose(out_nr, ref_nr, atol=1e-4, rtol=1e-4), (
        f"no-residual max abs err {jnp.max(jnp.abs(out_nr - ref_nr))}")

    print("KERNEL_OK")
</pallas_src>

<mosaic_0001>
module attributes {stable_mosaic.version = 11 : i64} {
  func.func @_root_fused_kernel(%arg0: i32, %arg1: i32, %arg2: memref<1x32x36xf32, #tpu.memory_space<vmem>>, %arg3: memref<16x96xf32, #tpu.memory_space<vmem>>, %arg4: memref<16x1xf32, #tpu.memory_space<vmem>>, %arg5: memref<16x1xf32, #tpu.memory_space<vmem>>, %arg6: memref<1x34xf32, #tpu.memory_space<vmem>>, %arg7: memref<2x16x16xf32, #tpu.memory_space<vmem>>, %arg8: memref<2x16x16xf32, #tpu.memory_space<vmem>>, %arg9: memref<1x16x34xf32, #tpu.memory_space<vmem>>, %arg10: memref<96x34xf32, #tpu.memory_space<vmem>>, %arg11: memref<16x1xf32, #tpu.memory_space<vmem>>, %arg12: memref<16x1xf32, #tpu.memory_space<vmem>>, %arg13: memref<16x1xf32, #tpu.memory_space<vmem>>, %arg14: memref<16x1xf32, #tpu.memory_space<vmem>>) attributes {dimension_semantics = [#tpu.dimension_semantics<arbitrary>, #tpu.dimension_semantics<arbitrary>], iteration_bounds = array<i64: 2, 1>, scalar_prefetch = 0 : i64, scratch_operands = 6 : i64, tpu.core_type = #tpu.core_type<tc>, window_params = [{transform_indices = @transform_0, window_bounds = array<i64: 1, 32, 36>}, {pipeline_mode = #tpu.pipeline_mode<synchronous>, transform_indices = @transform_1, window_bounds = array<i64: 16, 96>}, {pipeline_mode = #tpu.pipeline_mode<synchronous>, transform_indices = @transform_2, window_bounds = array<i64: 16, 1>}, {pipeline_mode = #tpu.pipeline_mode<synchronous>, transform_indices = @transform_3, window_bounds = array<i64: 16, 1>}, {pipeline_mode = #tpu.pipeline_mode<synchronous>, transform_indices = @transform_4, window_bounds = array<i64: 1, 34>}, {transform_indices = @transform_5, window_bounds = array<i64: 2, 16, 16>}, {transform_indices = @transform_6, window_bounds = array<i64: 2, 16, 16>}]} {
    %c0_i32 = arith.constant 0 : i32
    %0 = arith.cmpi eq, %arg0, %c0_i32 : i32
    %c0_i32_0 = arith.constant 0 : i32
    %1 = arith.cmpi eq, %arg1, %c0_i32_0 : i32
    %2 = arith.andi %0, %1 : i1
    %3 = arith.extui %2 : i1 to i32
    %c0_i32_1 = arith.constant 0 : i32
    %4 = arith.cmpi ne, %3, %c0_i32_1 : i32
    scf.if %4 {
      %cst = arith.constant 0.000000e+00 : f32
      %16 = vector.broadcast %cst : f32 to vector<16x1xf32>
      %c0 = arith.constant 0 : index
      %c0_8 = arith.constant 0 : index
      %17 = vector.load %arg11[%c0, %c0_8] : memref<16x1xf32, #tpu.memory_space<vmem>>, vector<16x1xf32>
      tpu.vector_store %arg11[%c0, %c0_8], %16 {strides = array<i32>} : memref<16x1xf32, #tpu.memory_space<vmem>>, vector<16x1xf32>,
      %cst_9 = arith.constant 0.000000e+00 : f32
      %18 = vector.broadcast %cst_9 : f32 to vector<16x1xf32>
      %c0_10 = arith.constant 0 : index
      %c0_11 = arith.constant 0 : index
      %19 = vector.load %arg12[%c0_10, %c0_11] : memref<16x1xf32, #tpu.memory_space<vmem>>, vector<16x1xf32>
      tpu.vector_store %arg12[%c0_10, %c0_11], %18 {strides = array<i32>} : memref<16x1xf32, #tpu.memory_space<vmem>>, vector<16x1xf32>,
    } else {
    }
    %c0_i32_2 = arith.constant 0 : i32
    %5 = arith.cmpi eq, %arg0, %c0_i32_2 : i32
    %6 = arith.extui %5 : i1 to i32
    %c0_i32_3 = arith.constant 0 : i32
    %7 = arith.cmpi ne, %6, %c0_i32_3 : i32
    scf.if %7 {
      %c0 = arith.constant 0 : index
      %c0_8 = arith.constant 0 : index
      %c0_9 = arith.constant 0 : index
      %16 = vector.load %arg2[%c0, %c0_8, %c0_9] : memref<1x32x36xf32, #tpu.memory_space<vmem>>, vector<1x32x36xf32>
      %17 = vector.shape_cast %16 : vector<1x32x36xf32> to vector<32x36xf32>
      %18 = vector.extract_strided_slice %17 {offsets = [0, 0], sizes = [32, 34], strides = [1, 1]} : vector<32x36xf32> to vector<32x34xf32>
      %c0_10 = arith.constant 0 : index
      %c0_11 = arith.constant 0 : index
      %19 = vector.load %arg10[%c0_10, %c0_11] : memref<96x34xf32, #tpu.memory_space<vmem>>, vector<32x34xf32>
      tpu.vector_store %arg10[%c0_10, %c0_11], %18 {strides = array<i32>} : memref<96x34xf32, #tpu.memory_space<vmem>>, vector<32x34xf32>,
      %20 = vector.extract_strided_slice %17 {offsets = [0, 1], sizes = [32, 34], strides = [1, 1]} : vector<32x36xf32> to vector<32x34xf32>
      %c32 = arith.constant 32 : index
      %c0_12 = arith.constant 0 : index
      %21 = vector.load %arg10[%c32, %c0_12] : memref<96x34xf32, #tpu.memory_space<vmem>>, vector<32x34xf32>
      tpu.vector_store %arg10[%c32, %c0_12], %20 {strides = array<i32>} : memref<96x34xf32, #tpu.memory_space<vmem>>, vector<32x34xf32>,
      %22 = vector.extract_strided_slice %17 {offsets = [0, 2], sizes = [32, 34], strides = [1, 1]} : vector<32x36xf32> to vector<32x34xf32>
      %c64 = arith.constant 64 : index
      %c0_13 = arith.constant 0 : index
      %23 = vector.load %arg10[%c64, %c0_13] : memref<96x34xf32, #tpu.memory_space<vmem>>, vector<32x34xf32>
      tpu.vector_store %arg10[%c64, %c0_13], %22 {strides = array<i32>} : memref<96x34xf32, #tpu.memory_space<vmem>>, vector<32x34xf32>,
      %c0_14 = arith.constant 0 : index
      %c0_15 = arith.constant 0 : index
      %24 = vector.load %arg3[%c0_14, %c0_15] : memref<16x96xf32, #tpu.memory_space<vmem>>, vector<16x96xf32>
      %c0_16 = arith.constant 0 : index
      %c0_17 = arith.constant 0 : index
      %25 = vector.load %arg10[%c0_16, %c0_17] : memref<96x34xf32, #tpu.memory_space<vmem>>, vector<96x34xf32>
      %cst = arith.constant dense<0.000000e+00> : vector<16x34xf32>
      %26 = tpu.matmul %24, %25, %cst {dimension_numbers = #tpu.dot_dimension_numbers<[1], [0], [0], [1], [0, 0, 1, 1], [], []>} : vector<16x96xf32>, vector<96x34xf32>, vector<16x34xf32> -> vector<16x34xf32>
      %27 = arith.index_cast %arg1 : i32 to index
      %c0_18 = arith.constant 0 : index
      %c0_19 = arith.constant 0 : index
      %28 = vector.load %arg9[%27, %c0_18, %c0_19] : memref<1x16x34xf32, #tpu.memory_space<vmem>>, vector<1x16x34xf32>
      %29 = vector.shape_cast %28 : vector<1x16x34xf32> to vector<16x34xf32>
      %30 = vector.shape_cast %26 : vector<16x34xf32> to vector<1x16x34xf32>
      tpu.vector_store %arg9[%27, %c0_18, %c0_19], %30 {strides = array<i32>} : memref<1x16x34xf32, #tpu.memory_space<vmem>>, vector<1x16x34xf32>,
      %c0_20 = arith.constant 0 : index
      %c0_21 = arith.constant 0 : index
      %31 = vector.load %arg6[%c0_20, %c0_21] : memref<1x34xf32, #tpu.memory_space<vmem>>, vector<1x34xf32>
      %32 = vector.broadcast %31 : vector<1x34xf32> to vector<16x34xf32>
      %33 = arith.mulf %26, %32 : vector<16x34xf32>
      %c0_22 = arith.constant 0 : index
      %c0_23 = arith.constant 0 : index
      %34 = vector.load %arg11[%c0_22, %c0_23] : memref<16x1xf32, #tpu.memory_space<vmem>>, vector<16x1xf32>
      %cst_24 = arith.constant dense<0.000000e+00> : vector<16xf32>
      %35 = vector.multi_reduction <add>, %33, %cst_24 [1] : vector<16x34xf32> to vector<16xf32>
      %36 = vector.shape_cast %35 : vector<16xf32> to vector<16x1xf32>
      %37 = arith.addf %34, %36 : vector<16x1xf32>
      %c0_25 = arith.constant 0 : index
      %c0_26 = arith.constant 0 : index
      %38 = vector.load %arg11[%c0_25, %c0_26] : memref<16x1xf32, #tpu.memory_space<vmem>>, vector<16x1xf32>
      tpu.vector_store %arg11[%c0_25, %c0_26], %37 {strides = array<i32>} : memref<16x1xf32, #tpu.memory_space<vmem>>, vector<16x1xf32>,
      %c0_27 = arith.constant 0 : index
      %c0_28 = arith.constant 0 : index
      %39 = vector.load %arg12[%c0_27, %c0_28] : memref<16x1xf32, #tpu.memory_space<vmem>>, vector<16x1xf32>
      %40 = arith.mulf %33, %26 : vector<16x34xf32>
      %cst_29 = arith.constant dense<0.000000e+00> : vector<16xf32>
      %41 = vector.multi_reduction <add>, %40, %cst_29 [1] : vector<16x34xf32> to vector<16xf32>
      %42 = vector.shape_cast %41 : vector<16xf32> to vector<16x1xf32>
      %43 = arith.addf %39, %42 : vector<16x1xf32>
      %c0_30 = arith.constant 0 : index
      %c0_31 = arith.constant 0 : index
      %44 = vector.load %arg12[%c0_30, %c0_31] : memref<16x1xf32, #tpu.memory_space<vmem>>, vector<16x1xf32>
      tpu.vector_store %arg12[%c0_30, %c0_31], %43 {strides = array<i32>} : memref<16x1xf32, #tpu.memory_space<vmem>>, vector<16x1xf32>,
    } else {
    }
    %c1_i32 = arith.constant 1 : i32
    %8 = arith.cmpi eq, %arg0, %c1_i32 : i32
    %c0_i32_4 = arith.constant 0 : i32
    %9 = arith.cmpi eq, %arg1, %c0_i32_4 : i32
    %10 = arith.andi %8, %9 : i1
    %11 = arith.extui %10 : i1 to i32
    %c0_i32_5 = arith.constant 0 : i32
    %12 = arith.cmpi ne, %11, %c0_i32_5 : i32
    scf.if %12 {
      %c0 = arith.constant 0 : index
      %c0_8 = arith.constant 0 : index
      %16 = vector.load %arg11[%c0, %c0_8] : memref<16x1xf32, #tpu.memory_space<vmem>>, vector<16x1xf32>
      %cst = arith.constant 3.125000e-02 : f32
      %17 = vector.broadcast %cst : f32 to vector<16x1xf32>
      %18 = arith.mulf %16, %17 : vector<16x1xf32>
      %c0_9 = arith.constant 0 : index
      %c0_10 = arith.constant 0 : index
      %19 = vector.load %arg12[%c0_9, %c0_10] : memref<16x1xf32, #tpu.memory_space<vmem>>, vector<16x1xf32>
      %cst_11 = arith.constant 3.125000e-02 : f32
      %20 = vector.broadcast %cst_11 : f32 to vector<16x1xf32>
      %21 = arith.mulf %19, %20 : vector<16x1xf32>
      %22 = arith.mulf %18, %18 : vector<16x1xf32>
      %23 = arith.subf %21, %22 : vector<16x1xf32>
      %cst_12 = arith.constant 0.000000e+00 : f32
      %24 = vector.broadcast %cst_12 : f32 to vector<16x1xf32>
      %25 = arith.maximumf %23, %24 : vector<16x1xf32>
      %c0_13 = arith.constant 0 : index
      %c0_14 = arith.constant 0 : index
      %26 = vector.load %arg4[%c0_13, %c0_14] : memref<16x1xf32, #tpu.memory_space<vmem>>, vector<16x1xf32>
      %cst_15 = arith.constant 9.99999974E-6 : f32
      %27 = vector.broadcast %cst_15 : f32 to vector<16x1xf32>
      %28 = arith.addf %25, %27 : vector<16x1xf32>
      %29 = math.rsqrt %28 : vector<16x1xf32>
      %30 = arith.mulf %26, %29 : vector<16x1xf32>
      %c0_16 = arith.constant 0 : index
      %c0_17 = arith.constant 0 : index
      %31 = vector.load %arg13[%c0_16, %c0_17] : memref<16x1xf32, #tpu.memory_space<vmem>>, vector<16x1xf32>
      tpu.vector_store %arg13[%c0_16, %c0_17], %30 {strides = array<i32>} : memref<16x1xf32, #tpu.memory_space<vmem>>, vector<16x1xf32>,
      %c0_18 = arith.constant 0 : index
      %c0_19 = arith.constant 0 : index
      %32 = vector.load %arg5[%c0_18, %c0_19] : memref<16x1xf32, #tpu.memory_space<vmem>>, vector<16x1xf32>
      %33 = arith.mulf %18, %30 : vector<16x1xf32>
      %34 = arith.subf %32, %33 : vector<16x1xf32>
      %c0_20 = arith.constant 0 : index
      %c0_21 = arith.constant 0 : index
      %35 = vector.load %arg14[%c0_20, %c0_21] : memref<16x1xf32, #tpu.memory_space<vmem>>, vector<16x1xf32>
      tpu.vector_store %arg14[%c0_20, %c0_21], %34 {strides = array<i32>} : memref<16x1xf32, #tpu.memory_space<vmem>>, vector<16x1xf32>,
    } else {
    }
    %c1_i32_6 = arith.constant 1 : i32
    %13 = arith.cmpi eq, %arg0, %c1_i32_6 : i32
    %14 = arith.extui %13 : i1 to i32
    %c0_i32_7 = arith.constant 0 : i32
    %15 = arith.cmpi ne, %14, %c0_i32_7 : i32
    scf.if %15 {
      %16 = arith.index_cast %arg1 : i32 to index
      %c0 = arith.constant 0 : index
      %c0_8 = arith.constant 0 : index
      %17 = vector.load %arg9[%16, %c0, %c0_8] : memref<1x16x34xf32, #tpu.memory_space<vmem>>, vector<1x16x34xf32>
      %18 = vector.shape_cast %17 : vector<1x16x34xf32> to vector<16x34xf32>
      %c0_9 = arith.constant 0 : index
      %c0_10 = arith.constant 0 : index
      %19 = vector.load %arg13[%c0_9, %c0_10] : memref<16x1xf32, #tpu.memory_space<vmem>>, vector<16x1xf32>
      %20 = vector.broadcast %19 : vector<16x1xf32> to vector<16x34xf32>
      %21 = arith.mulf %18, %20 : vector<16x34xf32>
      %c0_11 = arith.constant 0 : index
      %c0_12 = arith.constant 0 : index
      %22 = vector.load %arg14[%c0_11, %c0_12] : memref<16x1xf32, #tpu.memory_space<vmem>>, vector<16x1xf32>
      %23 = vector.broadcast %22 : vector<16x1xf32> to vector<16x34xf32>
      %24 = arith.addf %21, %23 : vector<16x34xf32>
      %25 = vector.extract_strided_slice %24 {offsets = [0, 0], sizes = [16, 16], strides = [1, 1]} : vector<16x34xf32> to vector<16x16xf32>
      %c0_13 = arith.constant 0 : index
      %c0_14 = arith.constant 0 : index
      %c0_15 = arith.constant 0 : index
      %26 = vector.load %arg7[%c0_13, %c0_14, %c0_15] : memref<2x16x16xf32, #tpu.memory_space<vmem>>, vector<1x16x16xf32>
      %27 = vector.shape_cast %26 : vector<1x16x16xf32> to vector<16x16xf32>
      %28 = arith.addf %25, %27 : vector<16x16xf32>
      %cst = arith.constant 0.000000e+00 : f32
      %29 = vector.broadcast %cst : f32 to vector<16x16xf32>
      %30 = arith.maximumf %28, %29 : vector<16x16xf32>
      %c0_16 = arith.constant 0 : index
      %c0_17 = arith.constant 0 : index
      %c0_18 = arith.constant 0 : index
      %31 = vector.load %arg8[%c0_16, %c0_17, %c0_18] : memref<2x16x16xf32, #tpu.memory_space<vmem>>, vector<1x16x16xf32>
      %32 = vector.shape_cast %31 : vector<1x16x16xf32> to vector<16x16xf32>
      %33 = vector.shape_cast %30 : vector<16x16xf32> to vector<1x16x16xf32>
      tpu.vector_store %arg8[%c0_16, %c0_17, %c0_18], %33 {strides = array<i32>} : memref<2x16x16xf32, #tpu.memory_space<vmem>>, vector<1x16x16xf32>,
      %34 = vector.extract_strided_slice %24 {offsets = [0, 18], sizes = [16, 16], strides = [1, 1]} : vector<16x34xf32> to vector<16x16xf32>
      %c1 = arith.constant 1 : index
      %c0_19 = arith.constant 0 : index
      %c0_20 = arith.constant 0 : index
      %35 = vector.load %arg7[%c1, %c0_19, %c0_20] : memref<2x16x16xf32, #tpu.memory_space<vmem>>, vector<1x16x16xf32>
      %36 = vector.shape_cast %35 : vector<1x16x16xf32> to vector<16x16xf32>
      %37 = arith.addf %34, %36 : vector<16x16xf32>
      %cst_21 = arith.constant 0.000000e+00 : f32
      %38 = vector.broadcast %cst_21 : f32 to vector<16x16xf32>
      %39 = arith.maximumf %37, %38 : vector<16x16xf32>
      %c1_22 = arith.constant 1 : index
      %c0_23 = arith.constant 0 : index
      %c0_24 = arith.constant 0 : index
      %40 = vector.load %arg8[%c1_22, %c0_23, %c0_24] : memref<2x16x16xf32, #tpu.memory_space<vmem>>, vector<1x16x16xf32>
      %41 = vector.shape_cast %40 : vector<1x16x16xf32> to vector<16x16xf32>
      %42 = vector.shape_cast %39 : vector<16x16xf32> to vector<1x16x16xf32>
      tpu.vector_store %arg8[%c1_22, %c0_23, %c0_24], %42 {strides = array<i32>} : memref<2x16x16xf32, #tpu.memory_space<vmem>>, vector<1x16x16xf32>,
    } else {
    }
    return
  }
  func.func @transform_0(%arg0: i32, %arg1: i32) -> (i32, i32, i32) {
    %c1_i32 = arith.constant 1 : i32
    %0 = arith.subi %c1_i32, %arg0 : i32
    %1 = arith.muli %arg1, %0 : i32
    %c0_i32 = arith.constant 0 : i32
    %c0_i32_0 = arith.constant 0 : i32
    %c0_i32_1 = arith.constant 0 : i32
    return %1, %c0_i32, %c0_i32_0 : i32, i32, i32
  }
  func.func @transform_1(%arg0: i32, %arg1: i32) -> (i32, i32) {
    %c0_i32 = arith.constant 0 : i32
    %c0_i32_0 = arith.constant 0 : i32
    %c0_i32_1 = arith.constant 0 : i32
    return %c0_i32, %c0_i32_0 : i32, i32
  }
  func.func @transform_2(%arg0: i32, %arg1: i32) -> (i32, i32) {
    %c0_i32 = arith.constant 0 : i32
    %c0_i32_0 = arith.constant 0 : i32
    %c0_i32_1 = arith.constant 0 : i32
    return %c0_i32, %c0_i32_0 : i32, i32
  }
  func.func @transform_3(%arg0: i32, %arg1: i32) -> (i32, i32) {
    %c0_i32 = arith.constant 0 : i32
    %c0_i32_0 = arith.constant 0 : i32
    %c0_i32_1 = arith.constant 0 : i32
    return %c0_i32, %c0_i32_0 : i32, i32
  }
  func.func @transform_4(%arg0: i32, %arg1: i32) -> (i32, i32) {
    %c0_i32 = arith.constant 0 : i32
    %c0_i32_0 = arith.constant 0 : i32
    %c0_i32_1 = arith.constant 0 : i32
    return %c0_i32, %c0_i32_0 : i32, i32
  }
  func.func @transform_5(%arg0: i32, %arg1: i32) -> (i32, i32, i32) {
    %0 = arith.muli %arg1, %arg0 : i32
    %c0_i32 = arith.constant 0 : i32
    %c0_i32_0 = arith.constant 0 : i32
    %c0_i32_1 = arith.constant 0 : i32
    return %0, %c0_i32, %c0_i32_0 : i32, i32, i32
  }
  func.func @transform_6(%arg0: i32, %arg1: i32) -> (i32, i32, i32) {
    %0 = arith.muli %arg1, %arg0 : i32
    %c0_i32 = arith.constant 0 : i32
    %c0_i32_0 = arith.constant 0 : i32
    %c0_i32_1 = arith.constant 0 : i32
    return %0, %c0_i32, %c0_i32_0 : i32, i32, i32
  }
}

</mosaic_0001>

<bundles_post_ra>
// kernel: tpu_custom_call.1
= control target key start
LH: loop header
LB: loop body
LE: loop exit
PB: predicated region body
PF: predicated region fallthrough
CT: control target
= control target key end

     0   :  { %11 = vsyncpa [#allocation9], 0  ;;  %s1150_s0 = inlined_call_operand.vmem [shape: f32[1,32,36], index: 0, kind: input, shape index: {}]   ;;  %s1151_s1 = inlined_call_operand.hbm [shape: f32[16,96], index: 1, kind: input, shape index: {}]   ;;  %s1152_s2 = inlined_call_operand.vmem [shape: f32[16,1], index: 2, kind: input, shape index: {}]   ;;  %s1153_s3 = inlined_call_operand.vmem [shape: f32[16,1], index: 3, kind: input, shape index: {}]   ;;  %s1154_s4 = inlined_call_operand.vmem [shape: f32[1,34], index: 4, kind: input, shape index: {}]   ;;  %s1155_s5 = inlined_call_operand.hbm [shape: f32[2,16,16], index: 5, kind: input, shape index: {}]   ;;  %s1156_s6 = inlined_call_operand.hbm [shape: f32[2,16,16], index: 6, kind: output, shape index: {}]  }
   0x1   :  { %12 = vsyncpa [#allocation12], 0 }
   0x2   :  { %14 = vsyncpa [#allocation12 + $0x1], 0 }
   0x3   :  { %15 = vsyncpa [#allocation10], 0 }
   0x4   :  { %17 = vsyncpa [#allocation10 + $0x1], 0  ;;  %s1024_s21 = smov 0   ;;  %s1026_s22 = smov 0  }
   0x5   :  { %s1028_s23 = smov 0  }
   0x6 LB: > { %s738_s24 = sadd.s32 4294967295, %s974_s23   ;;  %s739_s25 = sadd.s32 4294967294, %s974_s23   ;;  %s974_s23 = sphi %s1028_s23, %s23_s23   ;;  %s970_s22 = sphi %s1026_s22, %s1160_s22   ;;  %s966_s21 = sphi %s1024_s21, %s1159_s21  }
   0x7   : > { %s35_s26 = sadd.s32 1, %s970_s22  ;;  %p740_p0 = scmp.ge.s32.totalorder %s974_s23, 1 }
   0x8   : > { %p37_p1 = scmp.ge.s32.totalorder %s35_s26, 2  ;;  %p210_p2 = scmp.lt.s32.totalorder %s974_s23, 3 }
   0x9   : > { %p1046_p3 = scmp.eq.s32.totalorder %s738_s24, 0  ;;  %s221_s7 = sshll.u32 %s1151_s1, 4  ;;  %s222_s7 = int_to_ptr.hbm [resolvable:$true] %s221_s7 }
   0xa   : > { %s1162_s26 = smov (%p37_p1, %s35_s26), 0  ;;  %p1052_p4 = pnand %p740_p0, %p210_p2 }
   0xb   : > { %s976_s8 = smov [#allocation8]   ;;  %p742_p7 = scmp.ge.s32.totalorder %s974_s23, 2 }
   0xc   : > { %p788_p5 = pneg %p1052_p4  ;;  %s223_s9 = sshll.u32 %s976_s8, 4  ;;  %s224_s9 = int_to_ptr.vmem [resolvable:$true] %s223_s9 }
   0xd   : > { %p801_p8 = scmp.lt.s32.totalorder %s974_s23, 2  ;;  %s977_s10 = smov 128  }
   0xe   : > { %p789_p6 = pnand %p1046_p3, %p788_p5  ;;  %s978_s11 = smov 8  }
   0xf   : > { %p802_p9 = scmp.eq.s32.totalorder %s974_s23, 0  ;;  %s270_s14 = sshll.u32 %s1155_s5, 4  ;;  %s271_s14 = int_to_ptr.hbm [resolvable:$true] %s270_s14 }
  0x10   : > { %791 = dma.hbm_to_vmem [thread:$0]  (!%p789_p6), %s222_s7, 256, %s224_s9, [#allocation9], %s977_s10, %s977_s10, %s978_s11  }
  0x11   : > { %s979_s15 = smov [#allocation11]   ;;  %p793_p10 = pnand %p802_p9, %p801_p8 }
  0x12   : > { %s272_s16 = sshll.u32 %s979_s15, 4  ;;  %284 = sbr.rel (%p1052_p4) target bundleno = 749 (0x2ed), region = 44  ;;  %s273_s16 = int_to_ptr.vmem [resolvable:$true] %s272_s16 }
  0x13   : > { %795 = dma.hbm_to_vmem [thread:$0]  (!%p793_p10), %s271_s14, 512, %s273_s16, [#allocation12], %s977_s10, %s977_s10, %s978_s11  }
  0x17   : > { %953 = dma.done.wait (%p1046_p3), [#allocation9], 256  }
  0x18   : > { %955 = vsyncadd (%p1046_p3), [#allocation9], 4294967040 }
  0x19   : > { %957 = dma.done.wait (%p1046_p3), [#allocation12], 512  }
  0x1a   : > { %959 = vsyncadd (%p1046_p3), [#allocation12], 4294966784  ;;  %p345_p11 = scmp.eq.s32.totalorder %s966_s21, 0 }
  0x1b   : > { %vm351_vm0 = vcmask (%p345_p11), 7168   ;;  %v980_v0 = vmov (%p345_p11), 0.0  }
  0x1c   : > { %350 = sbr.rel (!%p345_p11) target bundleno = 33 (0x21), region = 56  ;;  %352 = vst.msk [vmem:[#allocation4] sm:$0xff] (%p345_p11), %vm351_vm0, %v980_v0 }
  0x1d   : > { %353 = vst.msk [vmem:[#allocation4 + $0x8] sm:$0xff] (%p345_p11), %vm351_vm0, %v980_v0 }
  0x1e   : > { %354 = vst.msk [vmem:[#allocation5] sm:$0xff] (%p345_p11), %vm351_vm0, %v980_v0 }
  0x1f   : > { %355 = vst.msk [vmem:[#allocation5 + $0x8] sm:$0xff] (%p345_p11), %vm351_vm0, %v980_v0 }
  0x21 PF: > { %p749_p12 = scmp.ne.s32.totalorder %s966_s21, 0 }
  0x22   : > { %s981_s27 = smov (!%p749_p12), 126   ;;  %s982_s30 = smov (!%p749_p12), 127  }
  0x23   : > { %358 = sbr.rel (%p749_p12) target bundleno = 449 (0x1c1), region = 60 }
  0x28   : > { %v362_v1 = vld [vmem:[%s1150_s0 + $0x18] sm:$0xff]  ;;  %vm363_vm1 = vcmask 277504   ;;  %v360_v2 = vld [vmem:[%s1150_s0 + $0x8] sm:$0xff]  ;;  %v361_v3 = vld [vmem:[%s1150_s0 + $0x10] sm:$0xff]  ;;  %vm418_vm2 = vcmask 785408   ;;  %vm468_vm3 = vcmask 7168  }
  0x29   : > { %394 = vrot.lane.b32.xlu0 %v362_v1, %s981_s27  ;;  %367 = vst.msk [vmem:[#allocation3 + $0x18] sm:$0xff] %vm363_vm1, %v362_v1  ;;  %390 = vrot.lane.b32.xlu1 %v360_v2, %s981_s27  ;;  %v359_v4 = vld [vmem:[%s1150_s0] sm:$0xff]  ;;  %v404_v25 = vld [vmem:[#allocation8] sm:$0xff]  ;;  %v405_v26 = vld [vmem:[#allocation8 + $0x8] sm:$0xff] }
  0x2a   : > { %365 = vst.msk [vmem:[#allocation3 + $0x8] sm:$0xff] %vm363_vm1, %v360_v2  ;;  %378 = vrot.lane.b32.xlu2 %v362_v1, %s982_s30  ;;  %v845_v27 = vld [vmem:[%s1154_s4] ss:$0 sm:$0xff]  ;;  %v458_v38 = vld [vmem:[#allocation4] sm:$0xff]  ;;  %v459_v39 = vld [vmem:[#allocation4 + $0x8] sm:$0xff] }
  0x2b   : > { %366 = vst.msk [vmem:[#allocation3 + $0x10] sm:$0xff] %vm363_vm1, %v361_v3  ;;  %v471_v41 = vld [vmem:[#allocation5] sm:$0xff]  ;;  %v472_v47 = vld [vmem:[#allocation5 + $0x8] sm:$0xff] }
  0x2c   : > { %364 = vst.msk [vmem:[#allocation3] sm:$0xff] %vm363_vm1, %v359_v4 }
  0x30   : > { %v409_v21 = vld [vmem:[#allocation3 + $0x18] sm:$0xff] }
  0x31   : > { %392 = vrot.lane.b32.xlu0 %v361_v3, %s981_s27  ;;  %388 = vrot.lane.b32.xlu1 %v359_v4, %s981_s27  ;;  %v407_v23 = vld [vmem:[#allocation3 + $0x8] sm:$0xff] }
  0x32   : > { %376 = vrot.lane.b32.xlu2 %v361_v3, %s982_s30  ;;  %v408_v22 = vld [vmem:[#allocation3 + $0x10] sm:$0xff] }
  0x33   : > { %v406_v24 = vld [vmem:[#allocation3] sm:$0xff] }
  0x39   : > { %374 = vrot.lane.b32.xlu0 %v360_v2, %s982_s30  ;;  %372 = vrot.lane.b32.xlu1 %v359_v4, %s982_s30 }
  0x84   : > { %v379_v5 = vpop.permute.xlu2 %378 }
  0x85   : > { %387 = vst.msk [vmem:[#allocation3 + $0x38] sm:$0xff] %vm363_vm1, %v379_v5 }
  0x8c   : > { %v377_v6 = vpop.permute.xlu2 %376  ;;  %v413_v17 = vld [vmem:[#allocation3 + $0x38] sm:$0xff] }
  0x8d   : > { %386 = vst.msk [vmem:[#allocation3 + $0x30] sm:$0xff] %vm363_vm1, %v377_v6 }
  0x94   : > { %v412_v18 = vld [vmem:[#allocation3 + $0x30] sm:$0xff] }
  0x9b   : > { %v395_v7 = vpop.permute.xlu0 %394  ;;  %v391_v8 = vpop.permute.xlu1 %390 }
  0x9c   : > { %403 = vst.msk [vmem:[#allocation3 + $0x58] sm:$0xff] %vm363_vm1, %v395_v7 }
  0x9d   : > { %401 = vst.msk [vmem:[#allocation3 + $0x48] sm:$0xff] %vm363_vm1, %v391_v8 }
  0xa3   : > { %v393_v9 = vpop.permute.xlu0 %392  ;;  %v417_v10 = vld [vmem:[#allocation3 + $0x58] sm:$0xff]  ;;  %v389_v11 = vpop.permute.xlu1 %388 }
  0xa4   : > { %402 = vst.msk [vmem:[#allocation3 + $0x50] sm:$0xff] %vm363_vm1, %v393_v9  ;;  %429 = vmatpush.msra.mxu0 %v417_v10  ;;  %764 = vmatpush.msra.mxu1 %v417_v10  ;;  %v415_v15 = vld [vmem:[#allocation3 + $0x48] sm:$0xff] }
  0xa5   : > { %400 = vst.msk [vmem:[#allocation3 + $0x40] sm:$0xff] %vm363_vm1, %v389_v11 }
  0xab   : > { %v416_v12 = vld [vmem:[#allocation3 + $0x50] sm:$0xff]  ;;  %v375_v13 = vpop.permute.xlu0 %374  ;;  %v373_v14 = vpop.permute.xlu1 %372 }
  0xac   : > { %430 = vmatpush.msra.mxu0 %v416_v12  ;;  %765 = vmatpush.msra.mxu1 %v416_v12  ;;  %385 = vst.msk [vmem:[#allocation3 + $0x28] sm:$0xff] %vm363_vm1, %v375_v13  ;;  %v414_v16 = vld [vmem:[#allocation3 + $0x40] sm:$0xff] }
  0xad   : > { %384 = vst.msk [vmem:[#allocation3 + $0x20] sm:$0xff] %vm363_vm1, %v373_v14 }
  0xae   : > { %431 = vmatpush.msra.mxu0 %v415_v15  ;;  %766 = vmatpush.msra.mxu1 %v415_v15 }
  0xb0   : > { %432 = vmatpush.msra.mxu0 %v414_v16  ;;  %767 = vmatpush.msra.mxu1 %v414_v16 }
  0xb2   : > { %433 = vmatpush.msra.mxu0 %v413_v17  ;;  %768 = vmatpush.msra.mxu1 %v413_v17 }
  0xb3   : > { %v411_v19 = vld [vmem:[#allocation3 + $0x28] sm:$0xff] }
  0xb4   : > { %434 = vmatpush.msra.mxu0 %v412_v18  ;;  %769 = vmatpush.msra.mxu1 %v412_v18  ;;  %v410_v20 = vld [vmem:[#allocation3 + $0x20] sm:$0xff] }
  0xb6   : > { %435 = vmatpush.msra.mxu0 %v411_v19  ;;  %770 = vmatpush.msra.mxu1 %v411_v19 }
  0xb8   : > { %436 = vmatpush.msra.mxu0 %v410_v20  ;;  %771 = vmatpush.msra.mxu1 %v410_v20 }
  0xba   : > { %437 = vmatpush.msra.mxu0 %v409_v21  ;;  %772 = vmatpush.msra.mxu1 %v409_v21 }
  0xbc   : > { %438 = vmatpush.msra.mxu0 %v408_v22  ;;  %773 = vmatpush.msra.mxu1 %v408_v22 }
  0xbe   : > { %439 = vmatpush.msra.mxu0 %v407_v23  ;;  %774 = vmatpush.msra.mxu1 %v407_v23 }
  0xc0   : > { %440 = vmatpush.msra.mxu0 %v406_v24  ;;  %775 = vmatpush.msra.mxu1 %v406_v24 }
  0xc1   : > { %750 = vmatmul.msk.f32.vlgmr.msra.gmra.mxu0 %vm418_vm2, %v404_v25  ;;  %751 = vmatmul.msk.f32.vlgmr.msra.gmra.mxu1 %vm418_vm2, %v405_v26 }
 0x13e   : > { %v442_v28 = vpop.f32.mrf.mxu0  ;;  %v445_v29 = vpop.f32.mrf.mxu1 }
 0x13f   : > { %450 = vst.msk [vmem:[#allocation2] sm:$0xff] %vm363_vm1, %v442_v28  ;;  %v456_v30 = vmul.f32 %v845_v27, %v442_v28  ;;  %v457_v31 = vmul.f32 %v845_v27, %v445_v29 }
 0x140   : > { %451 = vst.msk [vmem:[#allocation2 + $0x8] sm:$0xff] %vm363_vm1, %v445_v29 }
 0x141   : > { %v473_v32 = vmul.f32 %v456_v30, %v442_v28  ;;  %v460_v33 = vsel %vm363_vm1, %v456_v30, 0.0  ;;  %v463_v34 = vsel %vm363_vm1, %v457_v31, 0.0  ;;  %v474_v36 = vmul.f32 %v457_v31, %v445_v29 }
 0x142   : > { %461 = vadd.xlane.f32.xlu2 %v460_v33  ;;  %464 = vadd.xlane.f32.xlu0 %v463_v34 }
 0x143   : > { %v475_v35 = vsel %vm363_vm1, %v473_v32, 0.0  ;;  %v478_v37 = vsel %vm363_vm1, %v474_v36, 0.0 }
 0x144   : > { %476 = vadd.xlane.f32.xlu1 %v475_v35 }
 0x14a   : > { %479 = vadd.xlane.f32.xlu2 %v478_v37 }
 0x1b5   : > { %v462_v40 = vpop.xlane.xlu2 %461  ;;  %v465_v42 = vpop.xlane.xlu0 %464 }
 0x1b6   : > { %v466_v43 = vadd.f32 %v462_v40, %v458_v38  ;;  %v467_v44 = vadd.f32 %v465_v42, %v459_v39 }
 0x1b7   : > { %v477_v45 = vpop.xlane.xlu1 %476 }
 0x1b8   : > { %469 = vst.msk [vmem:[#allocation4] sm:$0xff] %vm468_vm3, %v466_v43  ;;  %v481_v46 = vadd.f32 %v477_v45, %v471_v41 }
 0x1b9   : > { %470 = vst.msk [vmem:[#allocation4 + $0x8] sm:$0xff] %vm468_vm3, %v467_v44 }
 0x1ba   : > { %483 = vst.msk [vmem:[#allocation5] sm:$0xff] %vm468_vm3, %v481_v46 }
 0x1bd   : > { %v480_v48 = vpop.xlane.xlu2 %479 }
 0x1be   : > { %v482_v49 = vadd.f32 %v480_v48, %v472_v47 }
 0x1c0   : > { %484 = vst.msk [vmem:[#allocation5 + $0x8] sm:$0xff] %vm468_vm3, %v482_v49 }
 0x1c1 PF: > { %p485_p13 = scmp.eq.s32.totalorder %s966_s21, 1 }
 0x1c2   : > { %v490_v50 = vld [vmem:[#allocation4] sm:$0xff] (%p485_p13)  ;;  %v494_v51 = vld [vmem:[#allocation5] sm:$0xff] (%p485_p13)  ;;  %v491_v54 = vld [vmem:[#allocation4 + $0x8] sm:$0xff] (%p485_p13)  ;;  %vm530_vm10 = vcmask (%p485_p13), 7168  }
 0x1c3   : > { %489 = sbr.rel (!%p485_p13) target bundleno = 489 (0x1e9), region = 64  ;;  %v492_v52 = vmul.f32 (%p485_p13), 0.03125, %v490_v50  ;;  %v496_v53 = vmul.f32 (%p485_p13), 0.03125, %v494_v51  ;;  %v493_v56 = vmul.f32 (%p485_p13), 0.03125, %v491_v54  ;;  %v504_v12 = vld [vmem:[%s1152_s2] sm:$0xff] (%p485_p13)  ;;  %v505_v14 = vld [vmem:[%s1152_s2 + $0x8] sm:$0xff] (%p485_p13) }
 0x1c4   : > { %v533_v20 = vld [vmem:[%s1153_s3] sm:$0xff] (%p485_p13)  ;;  %v534_v22 = vld [vmem:[%s1153_s3 + $0x8] sm:$0xff] (%p485_p13) }
 0x1c5   : > { %v498_v58 = vmul.f32 (%p485_p13), %v492_v52, %v492_v52  ;;  %v499_v59 = vmul.f32 (%p485_p13), %v493_v56, %v493_v56 }
 0x1c7   : > { %v495_v55 = vld [vmem:[#allocation5 + $0x8] sm:$0xff] (%p485_p13)  ;;  %v500_v60 = vsub.f32 (%p485_p13), %v496_v53, %v498_v58 }
 0x1c8   : > { %v497_v57 = vmul.f32 0.03125, %v495_v55 }
 0x1c9   : > { %v502_v62 = vmax.f32 %v500_v60, 0.0 }
 0x1ca   : > { %v501_v61 = vsub.f32 %v497_v57, %v499_v59 }
 0x1cb   : > { %v506_v0 = vadd.f32 1e-05, %v502_v62 }
 0x1cc   : > { %v503_v63 = vmax.f32 %v501_v61, 0.0 }
 0x1cd   : > { %846 = vrsqrt.f32 %v506_v0  ;;  %vm514_vm4 = vweird.f32 %v506_v0 }
 0x1ce   : > { %v507_v1 = vadd.f32 1e-05, %v503_v63 }
 0x1d0   : > { %848 = vrsqrt.f32 %v507_v1  ;;  %vm524_vm6 = vweird.f32 %v507_v1 }
 0x1d3   : > { %v847_v2 = vpop.eup %846 }
 0x1d4   : > { %v509_v4 = vmul.f32 %v847_v2, %v506_v0  ;;  %vm515_vm5 = vweird.f32 %v847_v2 }
 0x1d5   : > { %vm516_vm8 = vmor %vm514_vm4, %vm515_vm5 }
 0x1d6   : > { %v849_v3 = vpop.eup %848  ;;  %v510_v6 = vmul.f32 %v847_v2, %v509_v4 }
 0x1d7   : > { %v519_v5 = vmul.f32 %v849_v3, %v507_v1  ;;  %vm525_vm7 = vweird.f32 %v849_v3 }
 0x1d8   : > { %v511_v8 = vmul.f32 0.5, %v510_v6  ;;  %vm526_vm9 = vmor %vm524_vm6, %vm525_vm7 }
 0x1d9   : > { %v520_v7 = vmul.f32 %v849_v3, %v519_v5 }
 0x1da   : > { %v512_v10 = vsub.f32 1.5, %v511_v8 }
 0x1db   : > { %v521_v9 = vmul.f32 0.5, %v520_v7 }
 0x1dc   : > { %v513_v13 = vmul.f32 %v847_v2, %v512_v10 }
 0x1dd   : > { %v522_v11 = vsub.f32 1.5, %v521_v9 }
 0x1de   : > { %v517_v16 = vsel %vm516_vm8, %v847_v2, %v513_v13 }
 0x1df   : > { %v523_v15 = vmul.f32 %v849_v3, %v522_v11  ;;  %v528_v17 = vmul.f32 %v517_v16, %v504_v12 }
 0x1e1   : > { %v527_v18 = vsel %vm526_vm9, %v849_v3, %v523_v15  ;;  %531 = vst.msk [vmem:[#allocation6] sm:$0xff] %vm530_vm10, %v528_v17  ;;  %v535_v21 = vmul.f32 %v528_v17, %v492_v52 }
 0x1e2   : > { %v529_v19 = vmul.f32 %v527_v18, %v505_v14 }
 0x1e3   : > { %v537_v24 = vsub.f32 %v533_v20, %v535_v21 }
 0x1e4   : > { %532 = vst.msk [vmem:[#allocation6 + $0x8] sm:$0xff] %vm530_vm10, %v529_v19  ;;  %v536_v23 = vmul.f32 %v529_v19, %v493_v56 }
 0x1e5   : > { %539 = vst.msk [vmem:[#allocation7] sm:$0xff] %vm530_vm10, %v537_v24 }
 0x1e6   : > { %v538_v25 = vsub.f32 %v534_v22, %v536_v23 }
 0x1e8   : > { %540 = vst.msk [vmem:[#allocation7 + $0x8] sm:$0xff] %vm530_vm10, %v538_v25 }
 0x1e9 PF: > { %p753_p0 = scmp.ne.s32.totalorder %s966_s21, 1 }
 0x1ea   : > { %s984_s19 = smov (!%p753_p0), 18   ;;  %s985_s21 = smov (!%p753_p0), 110  }
 0x1eb   : > { %543 = sbr.rel (%p753_p0) target bundleno = 745 (0x2e9), region = 68 }
 0x1f0   : > { %v562_v26 = vld [vmem:[#allocation7] sm:$0xff]  ;;  %v548_v27 = vld [vmem:[#allocation6] sm:$0xff]  ;;  %v983_v28 = vmov 0   ;;  %v563_v30 = vld [vmem:[#allocation7 + $0x8] sm:$0xff]  ;;  %vm582_vm11 = vcmask 130048  }
 0x1f1   : > { %851 = vset.pattern.permute.xlu1 %v983_v28  ;;  %850 = vset.pattern.permute.xlu0 %v983_v28  ;;  %v754_v29 = vld [vmem:[#allocation11 + $0x10] sm:$0xff]  ;;  %v549_v31 = vld [vmem:[#allocation6 + $0x8] sm:$0xff]  ;;  %v546_v33 = vld [vmem:[#allocation2] sm:$0xff] }
 0x1f2   : > { %566 = vperm.xlu1 %851, %v562_v26   ;;  %552 = vperm.xlu0 %850, %v548_v27   ;;  %v755_v32 = vld [vmem:[#allocation11 + $0x18] sm:$0xff]  ;;  %v576_v38 = vld [vmem:[#allocation11] sm:$0xff]  ;;  %v547_v42 = vld [vmem:[#allocation2 + $0x8] sm:$0xff] }
 0x1f3   : > { %590 = vrot.lane.b32.xlu2 %v754_v29, %s984_s19  ;;  %v577_v49 = vld [vmem:[#allocation11 + $0x8] sm:$0xff] }
 0x1fa   : > { %571 = vperm.xlu1 %851, %v563_v30   ;;  %557 = vperm.xlu0 %850, %v549_v31  }
 0x1fb   : > { %592 = vrot.lane.b32.xlu2 %v755_v32, %s984_s19 }
 0x24d   : > { %v591_v34 = vpop.permute.xlu2 %590 }
 0x255   : > { %v593_v48 = vpop.permute.xlu2 %592 }
 0x264   : > { %v567_v35 = vpop.permute.xlu1 %566  ;;  %v553_v36 = vpop.permute.xlu0 %552 }
 0x265   : > { %v560_v37 = vmul.f32 %v553_v36, %v546_v33 }
 0x267   : > { %v574_v39 = vadd.f32 %v567_v35, %v560_v37 }
 0x269   : > { %v578_v40 = vadd.f32 %v576_v38, %v574_v39  ;;  %v596_v41 = vadd.f32 %v591_v34, %v574_v39 }
 0x26b   : > { %v580_v43 = vmax.f32 %v578_v40, 0.0  ;;  %v598_v44 = vmax.f32 %v596_v41, 0.0 }
 0x26c   : > { %v558_v45 = vpop.permute.xlu0 %557  ;;  %v572_v47 = vpop.permute.xlu1 %571 }
 0x26d   : > { %v561_v46 = vmul.f32 %v558_v45, %v547_v42  ;;  %602 = vrot.lane.b32.xlu0 %v598_v44, %s985_s21  ;;  %583 = vst.msk [vmem:[#allocation13] sm:$0xff] %vm582_vm11, %v580_v43 }
 0x26f   : > { %v575_v50 = vadd.f32 %v572_v47, %v561_v46 }
 0x271   : > { %v579_v51 = vadd.f32 %v577_v49, %v575_v50  ;;  %v597_v52 = vadd.f32 %v593_v48, %v575_v50 }
 0x273   : > { %v581_v53 = vmax.f32 %v579_v51, 0.0  ;;  %v599_v54 = vmax.f32 %v597_v52, 0.0 }
 0x275   : > { %604 = vrot.lane.b32.xlu1 %v599_v54, %s985_s21  ;;  %584 = vst.msk [vmem:[#allocation13 + $0x8] sm:$0xff] %vm582_vm11, %v581_v53 }
 0x2df   : > { %v603_v55 = vpop.permute.xlu0 %602 }
 0x2e0   : > { %756 = vst.msk [vmem:[#allocation13 + $0x10] sm:$0xff] %vm582_vm11, %v603_v55 }
 0x2e7   : > { %v605_v56 = vpop.permute.xlu1 %604 }
 0x2e8   : > { %757 = vst.msk [vmem:[#allocation13 + $0x18] sm:$0xff] %vm582_vm11, %v605_v56 }
 0x2e9 PF: > { %p805_p1 = scmp.eq.s32.totalorder %s738_s24, 1  ;;  %s628_s28 = sshll.u32 %s1156_s6, 4  ;;  %s629_s28 = int_to_ptr.hbm [resolvable:$true] %s628_s28 }
 0x2ea   : > { %s986_s29 = smov [#allocation13]   ;;  %s987_s7 = smov 128  }
 0x2eb   : > { %s626_s30 = sshll.u32 %s986_s29, 4  ;;  %s988_s8 = smov 8   ;;  %s627_s30 = int_to_ptr.vmem [resolvable:$true] %s626_s30 }
 0x2ec   : > { %785 = dma.vmem_to_hbm [thread:$0]  (%p805_p1), %s627_s30, 512, %s629_s28, [#allocation10], %s987_s7, %s987_s7, %s988_s8  }
 0x2ed PF: > { %p807_p2 = scmp.eq.s32.totalorder %s739_s25, 1 }
 0x2ef   : > { %p797_p3 = pnand %p807_p2, %p742_p7 }
 0x2f1   : > { %p798_p4 = pneg %p797_p3 }
 0x2f3   : > { %961 = dma.done.wait (%p798_p4), [#allocation10], 512  }
 0x2f4   : > { %963 = vsyncadd (%p798_p4), [#allocation10], 4294966784  ;;  %s23_s23 = sadd.s32 1, %s974_s23   ;;  %s1159_s21 = smov %s970_s22 }
 0x2f5   : > { %p20_p5 = scmp.ge.s32.totalorder %s23_s23, 4   ;;  %s1160_s22 = smov %s1162_s26 }
 0x2f7   :  { %22 = sbr.rel (!%p20_p5) target bundleno = 6 (0x6), region = 117 }
 0x2fc   :  { %650 = vsyncpa [#allocation9], 1 }
 0x2fd   :  { %652 = vsyncpa [#allocation9 + $0x1], 1 }
 0x2fe   :  { %653 = vsyncpa [#allocation12], 1 }
 0x2ff   :  { %655 = vsyncpa [#allocation12 + $0x1], 1 }
 0x300   :  { %656 = vsyncpa [#allocation10], 1 }
 0x301   :  { %658 = vsyncpa [#allocation10 + $0x1], 1 }

</bundles_post_ra>
